<compile_context>
chip_gen: v5e
topology: v5e:2x2
jax: 0.10.0
libtpu: 0.0.40
codegen_flags: <defaults>
</compile_context>

<pallas_src>
import jax
import jax.numpy as jnp
from jax.experimental import pallas as pl
from jax.experimental.pallas import tpu as pltpu

# ---- small, MambaConfig-consistent sizes -----------------------------------
BATCH = 2
SEQ = 8           # sequence length
HIDDEN = 32       # config.hidden_size
INTER = 64        # config.intermediate_size
STATE = 16        # config.state_size (ssm_state_size)
DT_RANK = 8       # config.time_step_rank
CONV_K = 4        # config.conv_kernel
EPS = 1e-5        # config.layer_norm_epsilon


def _silu(x):
    # sigmoid(x) = 0.5 * (1 + tanh(x/2)): single EUP op, no VPU divide.
    return x * (0.5 * jnp.tanh(0.5 * x) + 0.5)


def _softplus(x):
    # numerically stable softplus using only basic elementwise ops
    return jnp.maximum(x, 0.0) + jnp.log(1.0 + jnp.exp(-jnp.abs(x)))


# ---------------------------------------------------------------------------
# Pallas kernel: one grid step = one batch's full (SEQ, ...) block in VMEM.
# ---------------------------------------------------------------------------
def mamba_layer_kernel(hs_ref, norm_w_ref, in_wx_ref, in_wz_ref, conv_w_ref,
                       conv_b_ref, x_w_ref, dt_w_ref, dt_b_ref, a_log_t_ref,
                       d_ref, out_w_ref, out_ref, y_sc):
    x = hs_ref[...].astype(jnp.float32)                        # (S, H)

    # ---- RMSNorm (residual is returned by the wrapper as the input itself) --
    var = jnp.mean(x * x, axis=-1, keepdims=True)
    xn = x * jax.lax.rsqrt(var + EPS) * norm_w_ref[...]

    # ---- in_proj, pre-split into conv path / gate; bf16 MXU, f32 accum ----
    xn_b = xn.astype(jnp.bfloat16)
    xs = jnp.dot(xn_b, in_wx_ref[...], preferred_element_type=jnp.float32)  # (S, I)
    z = jnp.dot(xn_b, in_wz_ref[...], preferred_element_type=jnp.float32)   # (S, I)

    # ---- depthwise causal conv1d (+bias) + SiLU ----
    # tap j = sublane roll by j (XLU) + hoisted causal row masks.
    # TODO(synk): the sequence-chunked version must carry a (K-1)-row conv
    # tail in scratch across chunks instead of roll+mask.
    cw = conv_w_ref[...]                                        # (K, I)
    row_t = jax.lax.broadcasted_iota(jnp.int32, (SEQ, 1), 0)
    masks = [row_t >= j for j in range(1, CONV_K)]              # hoisted
    acc = xs * cw[CONV_K - 1:CONV_K, :]
    for j in range(1, CONV_K):
        shifted = pltpu.roll(xs, shift=j, axis=0)
        acc = acc + jnp.where(masks[j - 1], shifted, 0.0) \
            * cw[CONV_K - 1 - j:CONV_K - j, :]
    xc = _silu(acc + conv_b_ref[...])                           # (S, I)

    # ---- x_proj: one fused matmul -> [dt_raw | B | C], then low-rank dt ----
    # TODO(synk): at real sizes pad the (R + 2N) output width to a multiple of
    # 128 lanes so the three splits land on vreg boundaries.
    xc_b = xc.astype(jnp.bfloat16)
    ssm_in = jnp.dot(xc_b, x_w_ref[...], preferred_element_type=jnp.float32)
    dt_raw = ssm_in[:, :DT_RANK]                                # (S, R)
    b_mat = ssm_in[:, DT_RANK:DT_RANK + STATE]                  # (S, N)
    c_mat = ssm_in[:, DT_RANK + STATE:DT_RANK + 2 * STATE]      # (S, N)

    delta = _softplus(
        jnp.dot(dt_raw.astype(jnp.bfloat16), dt_w_ref[...],
                preferred_element_type=jnp.float32) + dt_b_ref[...])  # (S, I)

    a_t = -jnp.exp(a_log_t_ref[...])                            # (N, I) = A^T

    # ---- selective scan: precompute dA / dBu (EUP + broadcasts hoisted off
    # the serial chain), then a VPU-FMA + XLU-reduce per step ----------------
    dA = jnp.exp(delta[:, None, :] * a_t[None, :, :])           # (S, N, I)
    dBu = (delta * xc)[:, None, :] * b_mat[:, :, None]          # (S, N, I)
    c3 = c_mat[:, :, None]                                      # (S, N, 1)

    # TODO(synk): for long sequences convert to lax.fori_loop(..., unroll=4..8)
    # over sequence chunks with the state carried in scratch.
    state = jnp.zeros((STATE, INTER), jnp.float32)
    for t in range(SEQ):
        state = state * dA[t] + dBu[t]
        y_sc[t:t + 1, :] = jnp.sum(c3[t] * state, axis=0, keepdims=True)

    y = y_sc[...] + d_ref[...] * xc                              # (S, I)
    y = y * _silu(z)                                             # gating

    # ---- out_proj ----
    # TODO(synk): H=32 (<128 lanes) means this store is lane-masked and f32;
    # at real sizes hidden_size is a multiple of 128 and the output should be
    # emitted in bf16 (model dtype) to halve the HBM writeback.
    out = jnp.dot(y.astype(jnp.bfloat16), out_w_ref[...],
                  preferred_element_type=jnp.float32)
    out_ref[...] = out.astype(out_ref.dtype)


@jax.jit
def mamba_decoder_layer(hidden_states, params):
    B, S, H = hidden_states.shape
    x2 = hidden_states.reshape(B * S, H)

    # One-time weight preprocessing (lane-aligned in_proj split + bf16 cast of
    # every matmul weight; elementwise parameters stay f32).
    in_wx = params['in_w'][:, :INTER].astype(jnp.bfloat16)      # (H, I) conv path
    in_wz = params['in_w'][:, INTER:].astype(jnp.bfloat16)      # (H, I) gate
    x_w = params['x_w'].astype(jnp.bfloat16)                    # (I, R+2N)
    dt_w = params['dt_w'].astype(jnp.bfloat16)                  # (R, I)
    out_w = params['out_w'].astype(jnp.bfloat16)                # (I, H)
    weights = [params['norm_w'], in_wx, in_wz, params['conv_w'],
               params['conv_b'], x_w, dt_w, params['dt_b'],
               params['a_log_t'], params['d'], out_w]

    def bcast_spec(arr):
        nd = arr.ndim
        return pl.BlockSpec(arr.shape, lambda b, _nd=nd: (0,) * _nd)

    out2 = pl.pallas_call(
        mamba_layer_kernel,
        grid=(B,),
        in_specs=[pl.BlockSpec((S, H), lambda b: (b, 0))]
                 + [bcast_spec(w) for w in weights],
        out_specs=pl.BlockSpec((S, H), lambda b: (b, 0)),
        out_shape=jax.ShapeDtypeStruct((B * S, H), jnp.float32),
        scratch_shapes=[pltpu.VMEM((SEQ, INTER), jnp.float32)],
        compiler_params=pltpu.CompilerParams(
            dimension_semantics=("parallel",)),   # batch axis -> both v7x TCs
    )(x2, *weights)

    # Residual (residual-is-None branch) is byte-identical to the input, so we
    # return the input array directly instead of copying it through the kernel
    # (saves a full (B, S, H) HBM write).
    return out2.reshape(B, S, H), hidden_states


# ---------------------------------------------------------------------------
# Deterministic synthetic parameters (shapes from MambaMixer.__init__)
# ---------------------------------------------------------------------------
def init_params(key):
    ks = jax.random.split(key, 8)

    def rnd(k, shape, scale):
        return scale * jax.random.normal(k, shape, dtype=jnp.float32)

    a_log_t = (jnp.log(jnp.arange(1, STATE + 1, dtype=jnp.float32))[:, None]
               * jnp.ones((1, INTER), jnp.float32))            # A_log^T, (N, I)
    params = dict(
        norm_w=1.0 + 0.1 * jax.random.normal(ks[0], (1, HIDDEN), jnp.float32),
        in_w=rnd(ks[1], (HIDDEN, 2 * INTER), 0.1),             # in_proj.weight^T
        conv_w=rnd(ks[2], (CONV_K, INTER), 0.3),               # conv1d.weight[:,0,:]^T
        conv_b=rnd(ks[3], (1, INTER), 0.1),                    # conv1d.bias
        x_w=rnd(ks[4], (INTER, DT_RANK + 2 * STATE), 0.1),     # x_proj.weight^T
        dt_w=rnd(ks[5], (DT_RANK, INTER), 0.1),                # dt_proj.weight^T
        dt_b=rnd(ks[6], (1, INTER), 0.1),                      # dt_proj.bias
        a_log_t=a_log_t,
        d=jnp.ones((1, INTER), jnp.float32),                   # D
        out_w=rnd(ks[7], (INTER, HIDDEN), 0.1),                # out_proj.weight^T
    )
    return {k: v.astype(jnp.float32) for k, v in params.items()}


# ---------------------------------------------------------------------------
# Pure-JAX f32 reference (module-faithful math) for a correctness sanity check
# ---------------------------------------------------------------------------
def reference(hs, p):
    def silu(x):
        return x * (1.0 / (1.0 + jnp.exp(-x)))

    def one(x):
        var = jnp.mean(x * x, axis=-1, keepdims=True)
        xn = x * jax.lax.rsqrt(var + EPS) * p['norm_w']
        proj = xn @ p['in_w']
        xs, z = proj[:, :INTER], proj[:, INTER:]
        xpad = jnp.concatenate(
            [jnp.zeros((CONV_K - 1, INTER), jnp.float32), xs], axis=0)
        acc = jnp.zeros((SEQ, INTER), jnp.float32)
        for k in range(CONV_K):
            acc = acc + xpad[k:k + SEQ, :] * p['conv_w'][k:k + 1, :]
        xc = silu(acc + p['conv_b'])
        ssm_in = xc @ p['x_w']
        dt_raw = ssm_in[:, :DT_RANK]
        b_mat = ssm_in[:, DT_RANK:DT_RANK + STATE]
        c_mat = ssm_in[:, DT_RANK + STATE:DT_RANK + 2 * STATE]
        delta = _softplus(dt_raw @ p['dt_w'] + p['dt_b'])
        a_t = -jnp.exp(p['a_log_t'])
        b_t = b_mat.T
        state = jnp.zeros((STATE, INTER), jnp.float32)
        rows = []
        for t in range(SEQ):
            d_row = delta[t:t + 1, :]
            da = jnp.exp(d_row * a_t)
            dbu = (d_row * xc[t:t + 1, :]) * b_t[:, t:t + 1]
            state = state * da + dbu
            rows.append(c_mat[t:t + 1, :] @ state)
        y = jnp.concatenate(rows, axis=0) + p['d'] * xc
        y = y * silu(z)
        return y @ p['out_w'], x
    return jax.vmap(one)(hs)


if __name__ == "__main__":
    key = jax.random.PRNGKey(0)
    k_in, k_p = jax.random.split(key)
    hidden_states = jax.random.normal(k_in, (BATCH, SEQ, HIDDEN),
                                      dtype=jnp.float32)
    params = init_params(k_p)

    out, residual = mamba_decoder_layer(hidden_states, params)
    out, residual = jax.block_until_ready((out, residual))

    ref_out, ref_res = reference(hidden_states, params)
    err_out = float(jnp.max(jnp.abs(out - ref_out)))
    err_res = float(jnp.max(jnp.abs(residual - ref_res)))
    # Tolerance covers bf16 matmul inputs (f32 accumulation) vs the f32
    # reference plus the tanh-based SiLU rounding; outputs here are O(0.1).
    if not (bool(jnp.all(jnp.isfinite(out))) and err_out < 2e-2
            and err_res < 1e-6):
        raise AssertionError(f"mismatch: out={err_out}, residual={err_res}")
    print("KERNEL_OK")
</pallas_src>

<mosaic_0001>
module attributes {stable_mosaic.version = 11 : i64} {
  func.func @mamba_layer_kernel(%arg0: i32, %arg1: memref<8x32xf32, #tpu.memory_space<vmem>>, %arg2: memref<1x32xf32, #tpu.memory_space<vmem>>, %arg3: memref<32x64xbf16, #tpu.memory_space<vmem>>, %arg4: memref<32x64xbf16, #tpu.memory_space<vmem>>, %arg5: memref<4x64xf32, #tpu.memory_space<vmem>>, %arg6: memref<1x64xf32, #tpu.memory_space<vmem>>, %arg7: memref<64x40xbf16, #tpu.memory_space<vmem>>, %arg8: memref<8x64xbf16, #tpu.memory_space<vmem>>, %arg9: memref<1x64xf32, #tpu.memory_space<vmem>>, %arg10: memref<16x64xf32, #tpu.memory_space<vmem>>, %arg11: memref<1x64xf32, #tpu.memory_space<vmem>>, %arg12: memref<64x32xbf16, #tpu.memory_space<vmem>>, %arg13: memref<8x32xf32, #tpu.memory_space<vmem>>, %arg14: memref<8x64xf32, #tpu.memory_space<vmem>>) attributes {dimension_semantics = [#tpu.dimension_semantics<parallel>], iteration_bounds = array<i64: 2>, scalar_prefetch = 0 : i64, scratch_operands = 1 : i64, tpu.core_type = #tpu.core_type<tc>, window_params = [{transform_indices = @transform_0, window_bounds = array<i64: 8, 32>}, {pipeline_mode = #tpu.pipeline_mode<synchronous>, transform_indices = @transform_1, window_bounds = array<i64: 1, 32>}, {pipeline_mode = #tpu.pipeline_mode<synchronous>, transform_indices = @transform_2, window_bounds = array<i64: 32, 64>}, {pipeline_mode = #tpu.pipeline_mode<synchronous>, transform_indices = @transform_3, window_bounds = array<i64: 32, 64>}, {pipeline_mode = #tpu.pipeline_mode<synchronous>, transform_indices = @transform_4, window_bounds = array<i64: 4, 64>}, {pipeline_mode = #tpu.pipeline_mode<synchronous>, transform_indices = @transform_5, window_bounds = array<i64: 1, 64>}, {pipeline_mode = #tpu.pipeline_mode<synchronous>, transform_indices = @transform_6, window_bounds = array<i64: 64, 40>}, {pipeline_mode = #tpu.pipeline_mode<synchronous>, transform_indices = @transform_7, window_bounds = array<i64: 8, 64>}, {pipeline_mode = #tpu.pipeline_mode<synchronous>, transform_indices = @transform_8, window_bounds = array<i64: 1, 64>}, {pipeline_mode = #tpu.pipeline_mode<synchronous>, transform_indices = @transform_9, window_bounds = array<i64: 16, 64>}, {pipeline_mode = #tpu.pipeline_mode<synchronous>, transform_indices = @transform_10, window_bounds = array<i64: 1, 64>}, {pipeline_mode = #tpu.pipeline_mode<synchronous>, transform_indices = @transform_11, window_bounds = array<i64: 64, 32>}, {transform_indices = @transform_12, window_bounds = array<i64: 8, 32>}]} {
    %c0 = arith.constant 0 : index
    %c0_0 = arith.constant 0 : index
    %0 = vector.load %arg1[%c0, %c0_0] : memref<8x32xf32, #tpu.memory_space<vmem>>, vector<8x32xf32>
    %1 = arith.mulf %0, %0 : vector<8x32xf32>
    %cst = arith.constant dense<0.000000e+00> : vector<8xf32>
    %2 = vector.multi_reduction <add>, %1, %cst [1] : vector<8x32xf32> to vector<8xf32>
    %3 = vector.shape_cast %2 : vector<8xf32> to vector<8x1xf32>
    %cst_1 = arith.constant 3.200000e+01 : f32
    %4 = vector.broadcast %cst_1 : f32 to vector<8x1xf32>
    %5 = arith.divf %3, %4 : vector<8x1xf32>
    %cst_2 = arith.constant 9.99999974E-6 : f32
    %6 = vector.broadcast %cst_2 : f32 to vector<8x1xf32>
    %7 = arith.addf %5, %6 : vector<8x1xf32>
    %8 = math.rsqrt %7 : vector<8x1xf32>
    %9 = vector.broadcast %8 : vector<8x1xf32> to vector<8x32xf32>
    %10 = arith.mulf %0, %9 : vector<8x32xf32>
    %c0_3 = arith.constant 0 : index
    %c0_4 = arith.constant 0 : index
    %11 = vector.load %arg2[%c0_3, %c0_4] : memref<1x32xf32, #tpu.memory_space<vmem>>, vector<1x32xf32>
    %12 = vector.broadcast %11 : vector<1x32xf32> to vector<8x32xf32>
    %13 = arith.mulf %10, %12 : vector<8x32xf32>
    %14 = arith.truncf %13 : vector<8x32xf32> to vector<8x32xbf16>
    %c0_5 = arith.constant 0 : index
    %c0_6 = arith.constant 0 : index
    %15 = vector.load %arg3[%c0_5, %c0_6] : memref<32x64xbf16, #tpu.memory_space<vmem>>, vector<32x64xbf16>
    %cst_7 = arith.constant dense<0.000000e+00> : vector<8x64xf32>
    %16 = tpu.matmul %14, %15, %cst_7 {dimension_numbers = #tpu.dot_dimension_numbers<[1], [0], [0], [1], [0, 0, 1, 1], [], []>} : vector<8x32xbf16>, vector<32x64xbf16>, vector<8x64xf32> -> vector<8x64xf32>
    %c0_8 = arith.constant 0 : index
    %c0_9 = arith.constant 0 : index
    %17 = vector.load %arg4[%c0_8, %c0_9] : memref<32x64xbf16, #tpu.memory_space<vmem>>, vector<32x64xbf16>
    %cst_10 = arith.constant dense<0.000000e+00> : vector<8x64xf32>
    %18 = tpu.matmul %14, %17, %cst_10 {dimension_numbers = #tpu.dot_dimension_numbers<[1], [0], [0], [1], [0, 0, 1, 1], [], []>} : vector<8x32xbf16>, vector<32x64xbf16>, vector<8x64xf32> -> vector<8x64xf32>
    %c0_11 = arith.constant 0 : index
    %c0_12 = arith.constant 0 : index
    %19 = vector.load %arg5[%c0_11, %c0_12] : memref<4x64xf32, #tpu.memory_space<vmem>>, vector<4x64xf32>
    %20 = tpu.iota {dimensions = array<i32: 0>} : vector<8x1xi32>
    %c1_i32 = arith.constant 1 : i32
    %21 = vector.broadcast %c1_i32 : i32 to vector<8x1xi32>
    %22 = arith.cmpi sge, %20, %21 : vector<8x1xi32>
    %c2_i32 = arith.constant 2 : i32
    %23 = vector.broadcast %c2_i32 : i32 to vector<8x1xi32>
    %24 = arith.cmpi sge, %20, %23 : vector<8x1xi32>
    %c3_i32 = arith.constant 3 : i32
    %25 = vector.broadcast %c3_i32 : i32 to vector<8x1xi32>
    %26 = arith.cmpi sge, %20, %25 : vector<8x1xi32>
    %27 = vector.extract_strided_slice %19 {offsets = [3, 0], sizes = [1, 64], strides = [1, 1]} : vector<4x64xf32> to vector<1x64xf32>
    %28 = vector.broadcast %27 : vector<1x64xf32> to vector<8x64xf32>
    %29 = arith.mulf %16, %28 : vector<8x64xf32>
    %c1_i32_13 = arith.constant 1 : i32
    %30 = tpu.dynamic_rotate %16 by %c1_i32_13 dim 0 : vector<8x64xf32>, i32 -> vector<8x64xf32>
    %cst_14 = arith.constant 0.000000e+00 : f32
    %31 = vector.shape_cast %22 : vector<8x1xi1> to vector<8x1xi1>
    %32 = vector.broadcast %31 : vector<8x1xi1> to vector<8x64xi1>
    %33 = vector.broadcast %cst_14 : f32 to vector<8x64xf32>
    %34 = arith.select %32, %30, %33 : vector<8x64xi1>, vector<8x64xf32>
    %35 = vector.extract_strided_slice %19 {offsets = [2, 0], sizes = [1, 64], strides = [1, 1]} : vector<4x64xf32> to vector<1x64xf32>
    %36 = vector.broadcast %35 : vector<1x64xf32> to vector<8x64xf32>
    %37 = arith.mulf %34, %36 : vector<8x64xf32>
    %38 = arith.addf %29, %37 : vector<8x64xf32>
    %c2_i32_15 = arith.constant 2 : i32
    %39 = tpu.dynamic_rotate %16 by %c2_i32_15 dim 0 : vector<8x64xf32>, i32 -> vector<8x64xf32>
    %cst_16 = arith.constant 0.000000e+00 : f32
    %40 = vector.shape_cast %24 : vector<8x1xi1> to vector<8x1xi1>
    %41 = vector.broadcast %40 : vector<8x1xi1> to vector<8x64xi1>
    %42 = vector.broadcast %cst_16 : f32 to vector<8x64xf32>
    %43 = arith.select %41, %39, %42 : vector<8x64xi1>, vector<8x64xf32>
    %44 = vector.extract_strided_slice %19 {offsets = [1, 0], sizes = [1, 64], strides = [1, 1]} : vector<4x64xf32> to vector<1x64xf32>
    %45 = vector.broadcast %44 : vector<1x64xf32> to vector<8x64xf32>
    %46 = arith.mulf %43, %45 : vector<8x64xf32>
    %47 = arith.addf %38, %46 : vector<8x64xf32>
    %c3_i32_17 = arith.constant 3 : i32
    %48 = tpu.dynamic_rotate %16 by %c3_i32_17 dim 0 : vector<8x64xf32>, i32 -> vector<8x64xf32>
    %cst_18 = arith.constant 0.000000e+00 : f32
    %49 = vector.shape_cast %26 : vector<8x1xi1> to vector<8x1xi1>
    %50 = vector.broadcast %49 : vector<8x1xi1> to vector<8x64xi1>
    %51 = vector.broadcast %cst_18 : f32 to vector<8x64xf32>
    %52 = arith.select %50, %48, %51 : vector<8x64xi1>, vector<8x64xf32>
    %53 = vector.extract_strided_slice %19 {offsets = [0, 0], sizes = [1, 64], strides = [1, 1]} : vector<4x64xf32> to vector<1x64xf32>
    %54 = vector.broadcast %53 : vector<1x64xf32> to vector<8x64xf32>
    %55 = arith.mulf %52, %54 : vector<8x64xf32>
    %56 = arith.addf %47, %55 : vector<8x64xf32>
    %c0_19 = arith.constant 0 : index
    %c0_20 = arith.constant 0 : index
    %57 = vector.load %arg6[%c0_19, %c0_20] : memref<1x64xf32, #tpu.memory_space<vmem>>, vector<1x64xf32>
    %58 = vector.broadcast %57 : vector<1x64xf32> to vector<8x64xf32>
    %59 = arith.addf %56, %58 : vector<8x64xf32>
    %cst_21 = arith.constant 5.000000e-01 : f32
    %60 = vector.broadcast %cst_21 : f32 to vector<8x64xf32>
    %61 = arith.mulf %60, %59 : vector<8x64xf32>
    %62 = math.tanh %61 : vector<8x64xf32>
    %cst_22 = arith.constant 5.000000e-01 : f32
    %63 = vector.broadcast %cst_22 : f32 to vector<8x64xf32>
    %64 = arith.mulf %63, %62 : vector<8x64xf32>
    %cst_23 = arith.constant 5.000000e-01 : f32
    %65 = vector.broadcast %cst_23 : f32 to vector<8x64xf32>
    %66 = arith.addf %64, %65 : vector<8x64xf32>
    %67 = arith.mulf %59, %66 : vector<8x64xf32>
    %68 = arith.truncf %67 : vector<8x64xf32> to vector<8x64xbf16>
    %c0_24 = arith.constant 0 : index
    %c0_25 = arith.constant 0 : index
    %69 = vector.load %arg7[%c0_24, %c0_25] : memref<64x40xbf16, #tpu.memory_space<vmem>>, vector<64x40xbf16>
    %cst_26 = arith.constant dense<0.000000e+00> : vector<8x40xf32>
    %70 = tpu.matmul %68, %69, %cst_26 {dimension_numbers = #tpu.dot_dimension_numbers<[1], [0], [0], [1], [0, 0, 1, 1], [], []>} : vector<8x64xbf16>, vector<64x40xbf16>, vector<8x40xf32> -> vector<8x40xf32>
    %71 = vector.extract_strided_slice %70 {offsets = [0, 0], sizes = [8, 8], strides = [1, 1]} : vector<8x40xf32> to vector<8x8xf32>
    %72 = vector.extract_strided_slice %70 {offsets = [0, 8], sizes = [8, 16], strides = [1, 1]} : vector<8x40xf32> to vector<8x16xf32>
    %73 = vector.extract_strided_slice %70 {offsets = [0, 24], sizes = [8, 16], strides = [1, 1]} : vector<8x40xf32> to vector<8x16xf32>
    %74 = arith.truncf %71 : vector<8x8xf32> to vector<8x8xbf16>
    %c0_27 = arith.constant 0 : index
    %c0_28 = arith.constant 0 : index
    %75 = vector.load %arg8[%c0_27, %c0_28] : memref<8x64xbf16, #tpu.memory_space<vmem>>, vector<8x64xbf16>
    %cst_29 = arith.constant dense<0.000000e+00> : vector<8x64xf32>
    %76 = tpu.matmul %74, %75, %cst_29 {dimension_numbers = #tpu.dot_dimension_numbers<[1], [0], [0], [1], [0, 0, 1, 1], [], []>} : vector<8x8xbf16>, vector<8x64xbf16>, vector<8x64xf32> -> vector<8x64xf32>
    %c0_30 = arith.constant 0 : index
    %c0_31 = arith.constant 0 : index
    %77 = vector.load %arg9[%c0_30, %c0_31] : memref<1x64xf32, #tpu.memory_space<vmem>>, vector<1x64xf32>
    %78 = vector.broadcast %77 : vector<1x64xf32> to vector<8x64xf32>
    %79 = arith.addf %76, %78 : vector<8x64xf32>
    %cst_32 = arith.constant 0.000000e+00 : f32
    %80 = vector.broadcast %cst_32 : f32 to vector<8x64xf32>
    %81 = arith.maximumf %79, %80 : vector<8x64xf32>
    %82 = math.absf %79 : vector<8x64xf32>
    %cst_33 = arith.constant 0.000000e+00 : f32
    %83 = vector.broadcast %cst_33 : f32 to vector<8x64xf32>
    %84 = arith.subf %83, %82 : vector<8x64xf32>
    %85 = math.exp %84 : vector<8x64xf32>
    %cst_34 = arith.constant 1.000000e+00 : f32
    %86 = vector.broadcast %cst_34 : f32 to vector<8x64xf32>
    %87 = arith.addf %86, %85 : vector<8x64xf32>
    %88 = math.log %87 : vector<8x64xf32>
    %89 = arith.addf %81, %88 : vector<8x64xf32>
    %c0_35 = arith.constant 0 : index
    %c0_36 = arith.constant 0 : index
    %90 = vector.load %arg10[%c0_35, %c0_36] : memref<16x64xf32, #tpu.memory_space<vmem>>, vector<16x64xf32>
    %91 = math.exp %90 : vector<16x64xf32>
    %cst_37 = arith.constant 0.000000e+00 : f32
    %92 = vector.broadcast %cst_37 : f32 to vector<16x64xf32>
    %93 = arith.subf %92, %91 : vector<16x64xf32>
    %94 = vector.shape_cast %89 : vector<8x64xf32> to vector<8x1x64xf32>
    %95 = vector.shape_cast %93 : vector<16x64xf32> to vector<1x16x64xf32>
    %96 = vector.broadcast %94 : vector<8x1x64xf32> to vector<8x16x64xf32>
    %97 = vector.broadcast %95 : vector<1x16x64xf32> to vector<8x16x64xf32>
    %98 = arith.mulf %96, %97 : vector<8x16x64xf32>
    %99 = math.exp %98 : vector<8x16x64xf32>
    %100 = arith.mulf %89, %67 : vector<8x64xf32>
    %101 = vector.shape_cast %100 : vector<8x64xf32> to vector<8x1x64xf32>
    %102 = vector.shape_cast %72 : vector<8x16xf32> to vector<8x16x1xf32>
    %103 = vector.broadcast %101 : vector<8x1x64xf32> to vector<8x16x64xf32>
    %104 = vector.broadcast %102 : vector<8x16x1xf32> to vector<8x16x64xf32>
    %105 = arith.mulf %103, %104 : vector<8x16x64xf32>
    %106 = vector.shape_cast %73 : vector<8x16xf32> to vector<8x16x1xf32>
    %cst_38 = arith.constant 0.000000e+00 : f32
    %107 = vector.broadcast %cst_38 : f32 to vector<16x64xf32>
    %108 = vector.extract_strided_slice %99 {offsets = [0, 0, 0], sizes = [1, 16, 64], strides = [1, 1, 1]} : vector<8x16x64xf32> to vector<1x16x64xf32>
    %109 = vector.shape_cast %108 : vector<1x16x64xf32> to vector<16x64xf32>
    %110 = arith.mulf %107, %109 : vector<16x64xf32>
    %111 = vector.extract_strided_slice %105 {offsets = [0, 0, 0], sizes = [1, 16, 64], strides = [1, 1, 1]} : vector<8x16x64xf32> to vector<1x16x64xf32>
    %112 = vector.shape_cast %111 : vector<1x16x64xf32> to vector<16x64xf32>
    %113 = arith.addf %110, %112 : vector<16x64xf32>
    %114 = vector.extract_strided_slice %106 {offsets = [0, 0, 0], sizes = [1, 16, 1], strides = [1, 1, 1]} : vector<8x16x1xf32> to vector<1x16x1xf32>
    %115 = vector.shape_cast %114 : vector<1x16x1xf32> to vector<16x1xf32>
    %116 = vector.broadcast %115 : vector<16x1xf32> to vector<16x64xf32>
    %117 = arith.mulf %116, %113 : vector<16x64xf32>
    %cst_39 = arith.constant dense<0.000000e+00> : vector<64xf32>
    %118 = vector.multi_reduction <add>, %117, %cst_39 [0] : vector<16x64xf32> to vector<64xf32>
    %119 = vector.shape_cast %118 : vector<64xf32> to vector<1x64xf32>
    %c0_40 = arith.constant 0 : index
    %c0_41 = arith.constant 0 : index
    %120 = vector.load %arg14[%c0_40, %c0_41] : memref<8x64xf32, #tpu.memory_space<vmem>>, vector<1x64xf32>
    tpu.vector_store %arg14[%c0_40, %c0_41], %119 {strides = array<i32>} : memref<8x64xf32, #tpu.memory_space<vmem>>, vector<1x64xf32>,
    %121 = vector.extract_strided_slice %99 {offsets = [1, 0, 0], sizes = [1, 16, 64], strides = [1, 1, 1]} : vector<8x16x64xf32> to vector<1x16x64xf32>
    %122 = vector.shape_cast %121 : vector<1x16x64xf32> to vector<16x64xf32>
    %123 = arith.mulf %113, %122 : vector<16x64xf32>
    %124 = vector.extract_strided_slice %105 {offsets = [1, 0, 0], sizes = [1, 16, 64], strides = [1, 1, 1]} : vector<8x16x64xf32> to vector<1x16x64xf32>
    %125 = vector.shape_cast %124 : vector<1x16x64xf32> to vector<16x64xf32>
    %126 = arith.addf %123, %125 : vector<16x64xf32>
    %127 = vector.extract_strided_slice %106 {offsets = [1, 0, 0], sizes = [1, 16, 1], strides = [1, 1, 1]} : vector<8x16x1xf32> to vector<1x16x1xf32>
    %128 = vector.shape_cast %127 : vector<1x16x1xf32> to vector<16x1xf32>
    %129 = vector.broadcast %128 : vector<16x1xf32> to vector<16x64xf32>
    %130 = arith.mulf %129, %126 : vector<16x64xf32>
    %cst_42 = arith.constant dense<0.000000e+00> : vector<64xf32>
    %131 = vector.multi_reduction <add>, %130, %cst_42 [0] : vector<16x64xf32> to vector<64xf32>
    %132 = vector.shape_cast %131 : vector<64xf32> to vector<1x64xf32>
    %c1 = arith.constant 1 : index
    %c0_43 = arith.constant 0 : index
    %133 = vector.load %arg14[%c1, %c0_43] : memref<8x64xf32, #tpu.memory_space<vmem>>, vector<1x64xf32>
    tpu.vector_store %arg14[%c1, %c0_43], %132 {strides = array<i32>} : memref<8x64xf32, #tpu.memory_space<vmem>>, vector<1x64xf32>,
    %134 = vector.extract_strided_slice %99 {offsets = [2, 0, 0], sizes = [1, 16, 64], strides = [1, 1, 1]} : vector<8x16x64xf32> to vector<1x16x64xf32>
    %135 = vector.shape_cast %134 : vector<1x16x64xf32> to vector<16x64xf32>
    %136 = arith.mulf %126, %135 : vector<16x64xf32>
    %137 = vector.extract_strided_slice %105 {offsets = [2, 0, 0], sizes = [1, 16, 64], strides = [1, 1, 1]} : vector<8x16x64xf32> to vector<1x16x64xf32>
    %138 = vector.shape_cast %137 : vector<1x16x64xf32> to vector<16x64xf32>
    %139 = arith.addf %136, %138 : vector<16x64xf32>
    %140 = vector.extract_strided_slice %106 {offsets = [2, 0, 0], sizes = [1, 16, 1], strides = [1, 1, 1]} : vector<8x16x1xf32> to vector<1x16x1xf32>
    %141 = vector.shape_cast %140 : vector<1x16x1xf32> to vector<16x1xf32>
    %142 = vector.broadcast %141 : vector<16x1xf32> to vector<16x64xf32>
    %143 = arith.mulf %142, %139 : vector<16x64xf32>
    %cst_44 = arith.constant dense<0.000000e+00> : vector<64xf32>
    %144 = vector.multi_reduction <add>, %143, %cst_44 [0] : vector<16x64xf32> to vector<64xf32>
    %145 = vector.shape_cast %144 : vector<64xf32> to vector<1x64xf32>
    %c2 = arith.constant 2 : index
    %c0_45 = arith.constant 0 : index
    %146 = vector.load %arg14[%c2, %c0_45] : memref<8x64xf32, #tpu.memory_space<vmem>>, vector<1x64xf32>
    tpu.vector_store %arg14[%c2, %c0_45], %145 {strides = array<i32>} : memref<8x64xf32, #tpu.memory_space<vmem>>, vector<1x64xf32>,
    %147 = vector.extract_strided_slice %99 {offsets = [3, 0, 0], sizes = [1, 16, 64], strides = [1, 1, 1]} : vector<8x16x64xf32> to vector<1x16x64xf32>
    %148 = vector.shape_cast %147 : vector<1x16x64xf32> to vector<16x64xf32>
    %149 = arith.mulf %139, %148 : vector<16x64xf32>
    %150 = vector.extract_strided_slice %105 {offsets = [3, 0, 0], sizes = [1, 16, 64], strides = [1, 1, 1]} : vector<8x16x64xf32> to vector<1x16x64xf32>
    %151 = vector.shape_cast %150 : vector<1x16x64xf32> to vector<16x64xf32>
    %152 = arith.addf %149, %151 : vector<16x64xf32>
    %153 = vector.extract_strided_slice %106 {offsets = [3, 0, 0], sizes = [1, 16, 1], strides = [1, 1, 1]} : vector<8x16x1xf32> to vector<1x16x1xf32>
    %154 = vector.shape_cast %153 : vector<1x16x1xf32> to vector<16x1xf32>
    %155 = vector.broadcast %154 : vector<16x1xf32> to vector<16x64xf32>
    %156 = arith.mulf %155, %152 : vector<16x64xf32>
    %cst_46 = arith.constant dense<0.000000e+00> : vector<64xf32>
    %157 = vector.multi_reduction <add>, %156, %cst_46 [0] : vector<16x64xf32> to vector<64xf32>
    %158 = vector.shape_cast %157 : vector<64xf32> to vector<1x64xf32>
    %c3 = arith.constant 3 : index
    %c0_47 = arith.constant 0 : index
    %159 = vector.load %arg14[%c3, %c0_47] : memref<8x64xf32, #tpu.memory_space<vmem>>, vector<1x64xf32>
    tpu.vector_store %arg14[%c3, %c0_47], %158 {strides = array<i32>} : memref<8x64xf32, #tpu.memory_space<vmem>>, vector<1x64xf32>,
    %160 = vector.extract_strided_slice %99 {offsets = [4, 0, 0], sizes = [1, 16, 64], strides = [1, 1, 1]} : vector<8x16x64xf32> to vector<1x16x64xf32>
    %161 = vector.shape_cast %160 : vector<1x16x64xf32> to vector<16x64xf32>
    %162 = arith.mulf %152, %161 : vector<16x64xf32>
    %163 = vector.extract_strided_slice %105 {offsets = [4, 0, 0], sizes = [1, 16, 64], strides = [1, 1, 1]} : vector<8x16x64xf32> to vector<1x16x64xf32>
    %164 = vector.shape_cast %163 : vector<1x16x64xf32> to vector<16x64xf32>
    %165 = arith.addf %162, %164 : vector<16x64xf32>
    %166 = vector.extract_strided_slice %106 {offsets = [4, 0, 0], sizes = [1, 16, 1], strides = [1, 1, 1]} : vector<8x16x1xf32> to vector<1x16x1xf32>
    %167 = vector.shape_cast %166 : vector<1x16x1xf32> to vector<16x1xf32>
    %168 = vector.broadcast %167 : vector<16x1xf32> to vector<16x64xf32>
    %169 = arith.mulf %168, %165 : vector<16x64xf32>
    %cst_48 = arith.constant dense<0.000000e+00> : vector<64xf32>
    %170 = vector.multi_reduction <add>, %169, %cst_48 [0] : vector<16x64xf32> to vector<64xf32>
    %171 = vector.shape_cast %170 : vector<64xf32> to vector<1x64xf32>
    %c4 = arith.constant 4 : index
    %c0_49 = arith.constant 0 : index
    %172 = vector.load %arg14[%c4, %c0_49] : memref<8x64xf32, #tpu.memory_space<vmem>>, vector<1x64xf32>
    tpu.vector_store %arg14[%c4, %c0_49], %171 {strides = array<i32>} : memref<8x64xf32, #tpu.memory_space<vmem>>, vector<1x64xf32>,
    %173 = vector.extract_strided_slice %99 {offsets = [5, 0, 0], sizes = [1, 16, 64], strides = [1, 1, 1]} : vector<8x16x64xf32> to vector<1x16x64xf32>
    %174 = vector.shape_cast %173 : vector<1x16x64xf32> to vector<16x64xf32>
    %175 = arith.mulf %165, %174 : vector<16x64xf32>
    %176 = vector.extract_strided_slice %105 {offsets = [5, 0, 0], sizes = [1, 16, 64], strides = [1, 1, 1]} : vector<8x16x64xf32> to vector<1x16x64xf32>
    %177 = vector.shape_cast %176 : vector<1x16x64xf32> to vector<16x64xf32>
    %178 = arith.addf %175, %177 : vector<16x64xf32>
    %179 = vector.extract_strided_slice %106 {offsets = [5, 0, 0], sizes = [1, 16, 1], strides = [1, 1, 1]} : vector<8x16x1xf32> to vector<1x16x1xf32>
    %180 = vector.shape_cast %179 : vector<1x16x1xf32> to vector<16x1xf32>
    %181 = vector.broadcast %180 : vector<16x1xf32> to vector<16x64xf32>
    %182 = arith.mulf %181, %178 : vector<16x64xf32>
    %cst_50 = arith.constant dense<0.000000e+00> : vector<64xf32>
    %183 = vector.multi_reduction <add>, %182, %cst_50 [0] : vector<16x64xf32> to vector<64xf32>
    %184 = vector.shape_cast %183 : vector<64xf32> to vector<1x64xf32>
    %c5 = arith.constant 5 : index
    %c0_51 = arith.constant 0 : index
    %185 = vector.load %arg14[%c5, %c0_51] : memref<8x64xf32, #tpu.memory_space<vmem>>, vector<1x64xf32>
    tpu.vector_store %arg14[%c5, %c0_51], %184 {strides = array<i32>} : memref<8x64xf32, #tpu.memory_space<vmem>>, vector<1x64xf32>,
    %186 = vector.extract_strided_slice %99 {offsets = [6, 0, 0], sizes = [1, 16, 64], strides = [1, 1, 1]} : vector<8x16x64xf32> to vector<1x16x64xf32>
    %187 = vector.shape_cast %186 : vector<1x16x64xf32> to vector<16x64xf32>
    %188 = arith.mulf %178, %187 : vector<16x64xf32>
    %189 = vector.extract_strided_slice %105 {offsets = [6, 0, 0], sizes = [1, 16, 64], strides = [1, 1, 1]} : vector<8x16x64xf32> to vector<1x16x64xf32>
    %190 = vector.shape_cast %189 : vector<1x16x64xf32> to vector<16x64xf32>
    %191 = arith.addf %188, %190 : vector<16x64xf32>
    %192 = vector.extract_strided_slice %106 {offsets = [6, 0, 0], sizes = [1, 16, 1], strides = [1, 1, 1]} : vector<8x16x1xf32> to vector<1x16x1xf32>
    %193 = vector.shape_cast %192 : vector<1x16x1xf32> to vector<16x1xf32>
    %194 = vector.broadcast %193 : vector<16x1xf32> to vector<16x64xf32>
    %195 = arith.mulf %194, %191 : vector<16x64xf32>
    %cst_52 = arith.constant dense<0.000000e+00> : vector<64xf32>
    %196 = vector.multi_reduction <add>, %195, %cst_52 [0] : vector<16x64xf32> to vector<64xf32>
    %197 = vector.shape_cast %196 : vector<64xf32> to vector<1x64xf32>
    %c6 = arith.constant 6 : index
    %c0_53 = arith.constant 0 : index
    %198 = vector.load %arg14[%c6, %c0_53] : memref<8x64xf32, #tpu.memory_space<vmem>>, vector<1x64xf32>
    tpu.vector_store %arg14[%c6, %c0_53], %197 {strides = array<i32>} : memref<8x64xf32, #tpu.memory_space<vmem>>, vector<1x64xf32>,
    %199 = vector.extract_strided_slice %99 {offsets = [7, 0, 0], sizes = [1, 16, 64], strides = [1, 1, 1]} : vector<8x16x64xf32> to vector<1x16x64xf32>
    %200 = vector.shape_cast %199 : vector<1x16x64xf32> to vector<16x64xf32>
    %201 = arith.mulf %191, %200 : vector<16x64xf32>
    %202 = vector.extract_strided_slice %105 {offsets = [7, 0, 0], sizes = [1, 16, 64], strides = [1, 1, 1]} : vector<8x16x64xf32> to vector<1x16x64xf32>
    %203 = vector.shape_cast %202 : vector<1x16x64xf32> to vector<16x64xf32>
    %204 = arith.addf %201, %203 : vector<16x64xf32>
    %205 = vector.extract_strided_slice %106 {offsets = [7, 0, 0], sizes = [1, 16, 1], strides = [1, 1, 1]} : vector<8x16x1xf32> to vector<1x16x1xf32>
    %206 = vector.shape_cast %205 : vector<1x16x1xf32> to vector<16x1xf32>
    %207 = vector.broadcast %206 : vector<16x1xf32> to vector<16x64xf32>
    %208 = arith.mulf %207, %204 : vector<16x64xf32>
    %cst_54 = arith.constant dense<0.000000e+00> : vector<64xf32>
    %209 = vector.multi_reduction <add>, %208, %cst_54 [0] : vector<16x64xf32> to vector<64xf32>
    %210 = vector.shape_cast %209 : vector<64xf32> to vector<1x64xf32>
    %c7 = arith.constant 7 : index
    %c0_55 = arith.constant 0 : index
    %211 = vector.load %arg14[%c7, %c0_55] : memref<8x64xf32, #tpu.memory_space<vmem>>, vector<1x64xf32>
    tpu.vector_store %arg14[%c7, %c0_55], %210 {strides = array<i32>} : memref<8x64xf32, #tpu.memory_space<vmem>>, vector<1x64xf32>,
    %c0_56 = arith.constant 0 : index
    %c0_57 = arith.constant 0 : index
    %212 = vector.load %arg14[%c0_56, %c0_57] : memref<8x64xf32, #tpu.memory_space<vmem>>, vector<8x64xf32>
    %c0_58 = arith.constant 0 : index
    %c0_59 = arith.constant 0 : index
    %213 = vector.load %arg11[%c0_58, %c0_59] : memref<1x64xf32, #tpu.memory_space<vmem>>, vector<1x64xf32>
    %214 = vector.broadcast %213 : vector<1x64xf32> to vector<8x64xf32>
    %215 = arith.mulf %214, %67 : vector<8x64xf32>
    %216 = arith.addf %212, %215 : vector<8x64xf32>
    %cst_60 = arith.constant 5.000000e-01 : f32
    %217 = vector.broadcast %cst_60 : f32 to vector<8x64xf32>
    %218 = arith.mulf %217, %18 : vector<8x64xf32>
    %219 = math.tanh %218 : vector<8x64xf32>
    %cst_61 = arith.constant 5.000000e-01 : f32
    %220 = vector.broadcast %cst_61 : f32 to vector<8x64xf32>
    %221 = arith.mulf %220, %219 : vector<8x64xf32>
    %cst_62 = arith.constant 5.000000e-01 : f32
    %222 = vector.broadcast %cst_62 : f32 to vector<8x64xf32>
    %223 = arith.addf %221, %222 : vector<8x64xf32>
    %224 = arith.mulf %18, %223 : vector<8x64xf32>
    %225 = arith.mulf %216, %224 : vector<8x64xf32>
    %226 = arith.truncf %225 : vector<8x64xf32> to vector<8x64xbf16>
    %c0_63 = arith.constant 0 : index
    %c0_64 = arith.constant 0 : index
    %227 = vector.load %arg12[%c0_63, %c0_64] : memref<64x32xbf16, #tpu.memory_space<vmem>>, vector<64x32xbf16>
    %cst_65 = arith.constant dense<0.000000e+00> : vector<8x32xf32>
    %228 = tpu.matmul %226, %227, %cst_65 {dimension_numbers = #tpu.dot_dimension_numbers<[1], [0], [0], [1], [0, 0, 1, 1], [], []>} : vector<8x64xbf16>, vector<64x32xbf16>, vector<8x32xf32> -> vector<8x32xf32>
    %c0_66 = arith.constant 0 : index
    %c0_67 = arith.constant 0 : index
    %229 = vector.load %arg13[%c0_66, %c0_67] : memref<8x32xf32, #tpu.memory_space<vmem>>, vector<8x32xf32>
    tpu.vector_store %arg13[%c0_66, %c0_67], %228 {strides = array<i32>} : memref<8x32xf32, #tpu.memory_space<vmem>>, vector<8x32xf32>,
    return
  }
  func.func @transform_0(%arg0: i32) -> (i32, i32) {
    %c0_i32 = arith.constant 0 : i32
    %c0_i32_0 = arith.constant 0 : i32
    return %arg0, %c0_i32 : i32, i32
  }
  func.func @transform_1(%arg0: i32) -> (i32, i32) {
    %c0_i32 = arith.constant 0 : i32
    %c0_i32_0 = arith.constant 0 : i32
    %c0_i32_1 = arith.constant 0 : i32
    return %c0_i32, %c0_i32_0 : i32, i32
  }
  func.func @transform_2(%arg0: i32) -> (i32, i32) {
    %c0_i32 = arith.constant 0 : i32
    %c0_i32_0 = arith.constant 0 : i32
    %c0_i32_1 = arith.constant 0 : i32
    return %c0_i32, %c0_i32_0 : i32, i32
  }
  func.func @transform_3(%arg0: i32) -> (i32, i32) {
    %c0_i32 = arith.constant 0 : i32
    %c0_i32_0 = arith.constant 0 : i32
    %c0_i32_1 = arith.constant 0 : i32
    return %c0_i32, %c0_i32_0 : i32, i32
  }
  func.func @transform_4(%arg0: i32) -> (i32, i32) {
    %c0_i32 = arith.constant 0 : i32
    %c0_i32_0 = arith.constant 0 : i32
    %c0_i32_1 = arith.constant 0 : i32
    return %c0_i32, %c0_i32_0 : i32, i32
  }
  func.func @transform_5(%arg0: i32) -> (i32, i32) {
    %c0_i32 = arith.constant 0 : i32
    %c0_i32_0 = arith.constant 0 : i32
    %c0_i32_1 = arith.constant 0 : i32
    return %c0_i32, %c0_i32_0 : i32, i32
  }
  func.func @transform_6(%arg0: i32) -> (i32, i32) {
    %c0_i32 = arith.constant 0 : i32
    %c0_i32_0 = arith.constant 0 : i32
    %c0_i32_1 = arith.constant 0 : i32
    return %c0_i32, %c0_i32_0 : i32, i32
  }
  func.func @transform_7(%arg0: i32) -> (i32, i32) {
    %c0_i32 = arith.constant 0 : i32
    %c0_i32_0 = arith.constant 0 : i32
    %c0_i32_1 = arith.constant 0 : i32
    return %c0_i32, %c0_i32_0 : i32, i32
  }
  func.func @transform_8(%arg0: i32) -> (i32, i32) {
    %c0_i32 = arith.constant 0 : i32
    %c0_i32_0 = arith.constant 0 : i32
    %c0_i32_1 = arith.constant 0 : i32
    return %c0_i32, %c0_i32_0 : i32, i32
  }
  func.func @transform_9(%arg0: i32) -> (i32, i32) {
    %c0_i32 = arith.constant 0 : i32
    %c0_i32_0 = arith.constant 0 : i32
    %c0_i32_1 = arith.constant 0 : i32
    return %c0_i32, %c0_i32_0 : i32, i32
  }
  func.func @transform_10(%arg0: i32) -> (i32, i32) {
    %c0_i32 = arith.constant 0 : i32
    %c0_i32_0 = arith.constant 0 : i32
    %c0_i32_1 = arith.constant 0 : i32
    return %c0_i32, %c0_i32_0 : i32, i32
  }
  func.func @transform_11(%arg0: i32) -> (i32, i32) {
    %c0_i32 = arith.constant 0 : i32
    %c0_i32_0 = arith.constant 0 : i32
    %c0_i32_1 = arith.constant 0 : i32
    return %c0_i32, %c0_i32_0 : i32, i32
  }
  func.func @transform_12(%arg0: i32) -> (i32, i32) {
    %c0_i32 = arith.constant 0 : i32
    %c0_i32_0 = arith.constant 0 : i32
    return %arg0, %c0_i32 : i32, i32
  }
}

</mosaic_0001>

<bundles_post_ra>
// kernel: mamba_decoder_layer.1
= control target key start
LH: loop header
LB: loop body
LE: loop exit
PB: predicated region body
PF: predicated region fallthrough
CT: control target
= control target key end

     0   :  { %s1908_s0 = inlined_call_operand.vmem [shape: f32[16,32], index: 0, kind: input, shape index: {}]   ;;  %s1909_s1 = inlined_call_operand.vmem [shape: f32[1,32], index: 1, kind: input, shape index: {}]   ;;  %s1910_s2 = inlined_call_operand.vmem [shape: bf16[32,64], index: 2, kind: input, shape index: {}]   ;;  %s1911_s3 = inlined_call_operand.vmem [shape: bf16[32,64], index: 3, kind: input, shape index: {}]   ;;  %s1912_s4 = inlined_call_operand.vmem [shape: f32[4,64], index: 4, kind: input, shape index: {}]   ;;  %s1913_s5 = inlined_call_operand.vmem [shape: f32[1,64], index: 5, kind: input, shape index: {}]   ;;  %s1914_s6 = inlined_call_operand.vmem [shape: bf16[64,40], index: 6, kind: input, shape index: {}]   ;;  %s1915_s7 = inlined_call_operand.vmem [shape: bf16[8,64], index: 7, kind: input, shape index: {}]   ;;  %s1916_s8 = inlined_call_operand.vmem [shape: f32[1,64], index: 8, kind: input, shape index: {}]   ;;  %s1917_s9 = inlined_call_operand.vmem [shape: f32[16,64], index: 9, kind: input, shape index: {}]   ;;  %s1918_s10 = inlined_call_operand.vmem [shape: f32[1,64], index: 10, kind: input, shape index: {}]   ;;  %s1919_s11 = inlined_call_operand.vmem [shape: bf16[64,32], index: 11, kind: input, shape index: {}]   ;;  %s1920_s12 = inlined_call_operand.hbm [shape: f32[16,32], index: 12, kind: output, shape index: {}]  }
   0x1   :  { %1921 = sst [smem:[#allocation6_spill]] %s1908_s0 }
   0x2   :  { %1922 = sst [smem:[#allocation7_spill]] %s1909_s1 }
   0x3   :  { %1923 = sst [smem:[#allocation8_spill]] %s1910_s2 }
   0x4   :  { %1924 = sst [smem:[#allocation9_spill]] %s1911_s3 }
   0x5   :  { %17 = vsyncpa [#allocation4], 0 }
   0x6   :  { %19 = vsyncpa [#allocation4 + $0x1], 0  ;;  %s1534_s21 = smov 0   ;;  %s1536_s22 = smov 0  }
   0x7   :  { %s1538_s23 = smov 0   ;;  %s1540_s24 = smov 0  }
   0x8 LB: > { %s1555_s25 = sadd.s32 4294967295, %s1466_s24   ;;  %s1216_s26 = sadd.s32 4294967294, %s1466_s24   ;;  %s1466_s24 = sphi %s1540_s24, %s1934_s24   ;;  %s1462_s23 = sphi %s1538_s23, %s1933_s23   ;;  %s1458_s22 = sphi %s1536_s22, %s1932_s22   ;;  %s1454_s21 = sphi %s1534_s21, %s1931_s21  }
   0x9   : > { %s1559_s27 = sadd.s32 1, %s1466_s24   ;;  %s289_s28 = sadd.s32 1, %s1462_s23 }
   0xa   : > { %s286_s29 = ssub.s32 %s1466_s24, %s1559_s27  ;;  %p299_p0 = scmp.ne.s32.totalorder %s1462_s23, %s1458_s22 }
   0xb   : > { %p287_p1 = scmp.eq.s32.totalorder %s286_s29, 0  ;;  %p300_p2 = scmp.eq.s32.totalorder %s1555_s25, 1 }
   0xc   : > { %p305_p3 = scmp.ne.s32.totalorder %s1458_s22, %s1454_s21  ;;  %p306_p4 = scmp.eq.s32.totalorder %s1216_s26, 1 }
   0xd   : > { %s1570_s30 = scalar_select %p287_p1, %s1462_s23, %s289_s28  }
   0xe   : > { %p1572_p5 = por %p300_p2, %p299_p0  ;;  %p1576_p6 = por %p306_p4, %p305_p3 }
   0xf   : > { %p1219_p7 = scmp.ge.s32.totalorder %s1466_s24, 1  ;;  %p364_p8 = scmp.lt.s32.totalorder %s1466_s24, 3 }
  0x11   : > { %p365_p9 = pnand %p1219_p7, %p364_p8 }
  0x12   : > { %p405_p10 = scmp.lt.s32.totalorder (!%p365_p9), %s1555_s25, 1  ;;  %s1927_s0 = sld [smem:[#allocation6_spill]] (!%p365_p9) }
  0x13   : > { %368 = sbr.rel (%p365_p9) target bundleno = 912 (0x390), region = 68  ;;  %s1928_s2 = sld [smem:[#allocation8_spill]] (!%p365_p9) }
  0x14   : > { %s1929_s3 = sld [smem:[#allocation9_spill]] (!%p365_p9) }
  0x15   : > { %s1930_s1 = sld [smem:[#allocation7_spill]] (!%p365_p9) }
  0x18   : > { %s406_s15 = scalar_select %p405_p10, %s1555_s25, 1  ;;  %vm412_vm0 = vcmask 261120   ;;  %v1468_v3 = vmov 32.0   ;;  %v1286_v28 = vld [vmem:[%s1914_s6 + $0x18] sm:$0xff]  ;;  %v1285_v29 = vld [vmem:[%s1914_s6 + $0x10] sm:$0xff]  ;;  %v1284_v30 = vld [vmem:[%s1914_s6 + $0x8] sm:$0xff]  ;;  %v504_v31 = vlaneseq }
  0x19   : > { %1356 = vrcp.f32 %v1468_v3  ;;  %v1280_v7 = vld [vmem:[%s1928_s2 + $0x8] sm:$0xff]  ;;  %v1279_v10 = vld [vmem:[%s1928_s2] sm:$0xff]  ;;  %583 = vmatpush.bf16.msra.mxu2 %v1286_v28  ;;  %vm575_vm8 = vcmask 523264   ;;  %vm602_vm9 = vcmask 1043456   ;;  %vm598_vm10 = vcmask 64512  }
  0x1a   : > { %s1221_s16 = sshll.u32 %s406_s15, 3  ;;  %v1282_v8 = vld [vmem:[%s1929_s3 + $0x8] sm:$0xff]  ;;  %467 = vmatpush.bf16.msra.mxu0 %v1280_v7  ;;  %v1281_v11 = vld [vmem:[%s1929_s3] sm:$0xff]  ;;  %v1617_v33 = vshrl.u32 %v504_v31, 7  ;;  %vm964_vm11 = vcmask 516096   ;;  %s402_s15 = sand.u32 1, %s1458_s22  }
  0x1b   : > { %s408_s19 = scalar_lea.vmem %s1927_s0, %s1221_s16  ;;  %496 = vmatpush.bf16.msra.mxu1 %v1282_v8  ;;  %v1352_v23 = vld [vmem:[%s1930_s1] ss:$0 sm:$0xff]  ;;  %s1276_s16 = sshll.u32 %s1555_s25, 3 }
  0x1c   : > { %v410_v0 = vld [vmem:[%s408_s19] sm:$0xff]  ;;  %v1623_v35 = vadd.s32 16, %v1617_v33  ;;  %v1626_v36 = vadd.s32 8, %v1617_v33  ;;  %vm506_vm5 = vcmp.ge.s32.totalorder %v1617_v33, 1  ;;  %vm507_vm6 = vcmp.ge.s32.totalorder %v1617_v33, 2  ;;  %s1220_s17 = sshll.u32 %s402_s15, 3  ;;  %s1152_s20 = scalar_lea.hbm %s1920_s12, %s1276_s16 }
  0x1d   : > { %v411_v1 = vmul.f32 %v410_v0, %v410_v0  ;;  %584 = vmatpush.bf16.msra.mxu2 %v1285_v29  ;;  %v1283_v32 = vld [vmem:[%s1914_s6] sm:$0xff]  ;;  %vm508_vm7 = vcmp.ge.s32.totalorder %v1617_v33, 3  ;;  %s404_s26 = scalar_lea.vmem [#allocation3], %s1220_s17  ;;  %s1156_s29 = sshll.u32 %s1152_s20, 4  ;;  %s1157_s29 = int_to_ptr.hbm [resolvable:$true] %s1156_s29 }
  0x1e   : > { %468 = vmatpush.bf16.msra.mxu0 %v1279_v10  ;;  %v503_v34 = vld [vmem:[%s1912_s4] sm:$0xf]  ;;  %1334 = vset.pattern.permute.xlu2 %v1623_v35  ;;  %s1154_s28 = sshll.u32 %s404_s26, 4  ;;  %s1142_s0 = scalar_lea.sflag [#allocation4], %s402_s15  ;;  %s1155_s28 = int_to_ptr.vmem [resolvable:$true] %s1154_s28 }
  0x1f   : > { %v413_v2 = vsel %vm412_vm0, %v411_v1, 0.0  ;;  %v1357_v4 = vpop.eup %1356  ;;  %497 = vmatpush.bf16.msra.mxu1 %v1281_v11  ;;  %v509_v38 = vperm.slane %v503_v34, 3  ;;  %v515_v39 = vperm.slane %v503_v34, 2  ;;  %1332 = vset.pattern.permute.xlu1 %v1623_v35  ;;  %v522_v44 = vperm.slane %v503_v34, 1  ;;  %v1353_v57 = vld [vmem:[%s1913_s5] ss:$0 sm:$0xff] }
  0x20   : > { %414 = vadd.xlane.f32.xlu0 %v413_v2  ;;  %v417_v5 = vmul.f32 32.0, %v1357_v4  ;;  %vm421_vm1 = vweird.f32 %v1357_v4  ;;  %v529_v49 = vperm.slane %v503_v34, 0  ;;  %v593_v2 = vld [vmem:[%s1915_s7] sm:$0xf]  ;;  %v855_v11 = vadd.s32 24, %v1617_v33  ;;  %s1418_s1 = sshra.s32 %s1157_s29, 4  ;;  %s1419_s1 = int_to_ptr.hbm [resolvable:$true] %s1418_s1 }
  0x21   : > { %585 = vmatpush.bf16.msra.mxu2 %v1284_v30  ;;  %1331 = vset.pattern.permute.xlu0 %v1626_v36  ;;  %v604_v3 = vsel %vm602_vm9, %v593_v2, 0  ;;  %v629_v30 = vld [vmem:[%s1917_s9 + $0x8] sm:$0xff]  ;;  %v628_v31 = vld [vmem:[%s1917_s9] sm:$0xff]  ;;  %s1420_s2 = scalar_lea.hbm %s1419_s1, 8  ;;  %s1424_s16 = scalar_lea.hbm %s1920_s12, 16 }
  0x22   : > { %v418_v6 = vsub.f32 1.0, %v417_v5  ;;  %613 = vmatpush.bf16.msra.mxu3 %v604_v3  ;;  %v630_v34 = vmul.f32 1.442695, %v628_v31  ;;  %p1421_p11 = scmp.ne.s32.totalorder %s1419_s1, %s1420_s2  ;;  %p1425_p0 = scmp.lt.s32.totalorder %s1419_s1, %s1920_s12 }
  0x23   : > { %p1426_p1 = scmp.lt.s32.totalorder %s1424_s16, %s1420_s2 }
  0x24   : > { %v419_v9 = vmul.f32 %v1357_v4, %v418_v6  ;;  %p1422_p12 = pnand %p1421_p11, %p1572_p5 }
  0x25   : > { %586 = vmatpush.bf16.msra.mxu2 %v1283_v32  ;;  %v632_v32 = vmul.f32 1.442695, %v629_v30  ;;  %p1427_p2 = por %p1426_p1, %p1425_p0 }
  0x26   : > { %v420_v12 = vadd.f32 %v1357_v4, %v419_v9  ;;  %p1423_p13 = pneg %p1422_p12 }
  0x28   : > { %v422_v13 = vsel %vm421_vm1, %v1357_v4, %v420_v12  ;;  %p1428_p3 = pnand %p1427_p2, %p1423_p13 }
  0x93   : > { %v415_v14 = vpop.xlane.xlu0 %414 }
  0x94   : > { %v423_v15 = vmul.f32 %v422_v13, %v415_v14  ;;  %v861_v14 = vadd.s32 32, %v1617_v33 }
  0x96   : > { %v424_v16 = vadd.f32 1e-05, %v423_v15 }
  0x98   : > { %1358 = vrsqrt.f32 %v424_v16  ;;  %vm431_vm3 = vweird.f32 %v424_v16 }
  0x9e   : > { %v1359_v17 = vpop.eup %1358 }
  0x9f   : > { %v426_v18 = vmul.f32 %v1359_v17, %v424_v16  ;;  %vm432_vm2 = vweird.f32 %v1359_v17 }
  0xa0   : > { %vm433_vm4 = vmor %vm431_vm3, %vm432_vm2 }
  0xa1   : > { %v427_v19 = vmul.f32 %v1359_v17, %v426_v18 }
  0xa3   : > { %v428_v20 = vmul.f32 0.5, %v427_v19  ;;  %v1354_v19 = vld [vmem:[%s1916_s8] ss:$0 sm:$0xff] }
  0xa5   : > { %v429_v21 = vsub.f32 1.5, %v428_v20 }
  0xa7   : > { %v430_v22 = vmul.f32 %v1359_v17, %v429_v21 }
  0xa9   : > { %v434_v24 = vsel %vm433_vm4, %v1359_v17, %v430_v22 }
  0xaa   : > { %v435_v25 = vmul.f32 %v434_v24, %v410_v0 }
  0xac   : > { %v440_v26 = vmul.f32 %v1352_v23, %v435_v25 }
  0xae   : > { %v441_v27 = vpack.c.bf16 %v440_v26, %v440_v26 }
  0xb0   : > { %1230 = vmatmul.msk.bf16.vlgmr.msra.gmra.mxu0 %vm412_vm0, %v441_v27  ;;  %1239 = vmatmul.msk.bf16.vlgmr.msra.gmra.mxu1 %vm412_vm0, %v441_v27 }
 0x12d   : > { %v470_v37 = vpop.f32.mrf.mxu0  ;;  %v1630_v40 = vpop.f32.mrf.mxu1 }
 0x12e   : > { %v511_v41 = vrot.slane %v470_v37, 7  ;;  %v518_v42 = vrot.slane %v470_v37, 6  ;;  %v525_v43 = vrot.slane %v470_v37, 5  ;;  %v510_v47 = vmul.f32 %v509_v38, %v470_v37 }
 0x130   : > { %v514_v45 = vsel %vm506_vm5, %v511_v41, 0.0  ;;  %v521_v46 = vsel %vm507_vm6, %v518_v42, 0.0  ;;  %v528_v50 = vsel %vm508_vm7, %v525_v43, 0.0 }
 0x131   : > { %v516_v48 = vmul.f32 %v515_v39, %v514_v45  ;;  %v523_v52 = vmul.f32 %v522_v44, %v521_v46  ;;  %v530_v54 = vmul.f32 %v529_v49, %v528_v50 }
 0x133   : > { %v517_v51 = vadd.f32 %v516_v48, %v510_v47 }
 0x135   : > { %v524_v53 = vadd.f32 %v523_v52, %v517_v51  ;;  %v472_v55 = vpop.f32.mrf.mxu0  ;;  %v501_v56 = vpop.f32.mrf.mxu1 }
 0x137   : > { %v531_v58 = vadd.f32 %v530_v54, %v524_v53 }
 0x139   : > { %v536_v59 = vadd.f32 %v1353_v57, %v531_v58 }
 0x13b   : > { %v537_v60 = vmul.f32 0.5, %v536_v59 }
 0x13d   : > { %1360 = vtanh.f32 %v537_v60 }
 0x143   : > { %v1361_v61 = vpop.eup %1360 }
 0x144   : > { %v539_v62 = vmul.f32 0.5, %v1361_v61 }
 0x146   : > { %v540_v63 = vadd.f32 0.5, %v539_v62 }
 0x148   : > { %v1639_v0 = vmul.f32 %v540_v63, %v536_v59 }
 0x14a   : > { %v542_v1 = vpack.c.bf16 %v1639_v0, %v1639_v0 }
 0x14c   : > { %1256 = vmatmul.msk.bf16.vlgmr.msra.gmra.mxu2 %vm575_vm8, %v542_v1 }
 0x1cf   : > { %v588_v4 = vpop.f32.mrf.mxu2 }
 0x1d0   : > { %v730_v5 = vperm.slane %v588_v4, 1  ;;  %v717_v6 = vperm.slane %v588_v4, 0  ;;  %v592_v7 = vpack.c.bf16 %v588_v4, %v588_v4  ;;  %v743_v9 = vperm.slane %v588_v4, 2 }
 0x1d1   : > { %v1650_v10 = vperm.slane %v588_v4, 6  ;;  %v756_v12 = vperm.slane %v588_v4, 3  ;;  %v769_v13 = vperm.slane %v588_v4, 4  ;;  %v782_v15 = vperm.slane %v588_v4, 5 }
 0x1d2   : > { %741 = vperm.xlu2 %1334, %v730_v5   ;;  %728 = vperm.xlu1 %1332, %v717_v6   ;;  %v808_v16 = vperm.slane %v588_v4, 7 }
 0x1d3   : > { %722 = vperm.xlu0 %1331, %v717_v6   ;;  %1257 = vmatmul.msk.bf16.vlgmr.msra.gmra.mxu3 %vm598_vm10, %v592_v7 }
 0x1d7   : > { %v590_v8 = vpop.f32.mrf.mxu2 }
 0x1da   : > { %1335 = vset.pattern.permute.xlu2 %v1626_v36  ;;  %1333 = vset.pattern.permute.xlu1 %v1626_v36 }
 0x1db   : > { %1337 = vset.pattern.permute.xlu0 %v1623_v35 }
 0x1e2   : > { %748 = vperm.xlu2 %1335, %v743_v9   ;;  %735 = vperm.xlu1 %1333, %v730_v5  }
 0x1e3   : > { %806 = vperm.xlu0 %1337, %v1650_v10  }
 0x1ea   : > { %761 = vperm.xlu2 %1335, %v756_v12   ;;  %1336 = vset.pattern.permute.xlu1 %v1623_v35 }
 0x1eb   : > { %1342 = vset.pattern.permute.xlu0 %v855_v11 }
 0x1f2   : > { %774 = vperm.xlu2 %1335, %v769_v13   ;;  %754 = vperm.xlu1 %1336, %v743_v9  }
 0x1f3   : > { %869 = vperm.xlu0 %1342, %v730_v5  }
 0x1fa   : > { %787 = vperm.xlu2 %1335, %v782_v15   ;;  %767 = vperm.xlu1 %1336, %v756_v12  }
 0x1fb   : > { %1345 = vset.pattern.permute.xlu0 %v861_v14 }
 0x202   : > { %800 = vperm.xlu2 %1335, %v1650_v10   ;;  %780 = vperm.xlu1 %1336, %v769_v13  }
 0x203   : > { %899 = vperm.xlu0 %1345, %v756_v12  }
 0x20a   : > { %1339 = vset.pattern.permute.xlu2 %v1623_v35  ;;  %793 = vperm.xlu1 %1336, %v782_v15  }
 0x20b   : > { %1348 = vset.pattern.permute.xlu0 %v855_v11 }
 0x212   : > { %819 = vperm.xlu2 %1339, %v808_v16   ;;  %1338 = vset.pattern.permute.xlu1 %v1626_v36 }
 0x213   : > { %929 = vperm.xlu0 %1348, %v1650_v10  }
 0x21a   : > { %1341 = vset.pattern.permute.xlu2 %v861_v14  ;;  %813 = vperm.xlu1 %1338, %v808_v16  }
 0x21b   : > { %1351 = vset.pattern.permute.xlu0 %v861_v14 }
 0x222   : > { %863 = vperm.xlu2 %1341, %v717_v6   ;;  %1340 = vset.pattern.permute.xlu1 %v855_v11 }
 0x22a   : > { %1344 = vset.pattern.permute.xlu2 %v855_v11  ;;  %857 = vperm.xlu1 %1340, %v717_v6  }
 0x22c   : > { %v1660_v17 = vpop.permute.xlu2 %741 }
 0x232   : > { %881 = vperm.xlu2 %1344, %v743_v9   ;;  %1343 = vset.pattern.permute.xlu1 %v861_v14 }
 0x23a   : > { %893 = vperm.xlu2 %1344, %v756_v12   ;;  %875 = vperm.xlu1 %1343, %v730_v5  }
 0x23c   : > { %v1662_v18 = vpop.permute.xlu2 %748 }
 0x242   : > { %1347 = vset.pattern.permute.xlu2 %v861_v14  ;;  %887 = vperm.xlu1 %1343, %v743_v9  }
 0x244   : > { %v1667_v20 = vpop.permute.xlu2 %761  ;;  %v1669_v21 = vpop.permute.xlu1 %728 }
 0x245   : > { %v723_v3 = vpop.permute.xlu0 %722 }
 0x24a   : > { %911 = vperm.xlu2 %1347, %v769_v13   ;;  %1346 = vset.pattern.permute.xlu1 %v855_v11 }
 0x24c   : > { %v1673_v29 = vpop.permute.xlu2 %774 }
 0x252   : > { %923 = vperm.xlu2 %1347, %v782_v15   ;;  %905 = vperm.xlu1 %1346, %v769_v13  }
 0x254   : > { %v1671_v27 = vpop.permute.xlu1 %735  ;;  %v1683_v37 = vpop.permute.xlu2 %787 }
 0x256   : > { %v615_v22 = vpop.f32.mrf.mxu3 }
 0x257   : > { %v616_v23 = vadd.f32 %v1354_v19, %v615_v22 }
 0x259   : > { %v620_v24 = vand.u32 2147483647, %v616_v23  ;;  %v619_v42 = vmax.f32 %v616_v23, 0.0 }
 0x25a   : > { %1350 = vset.pattern.permute.xlu2 %v855_v11  ;;  %917 = vperm.xlu1 %1346, %v782_v15  }
 0x25b   : > { %v621_v25 = vsub.f32 0.0, %v620_v24 }
 0x25c   : > { %v801_v52 = vpop.permute.xlu2 %800 }
 0x25d   : > { %v622_v26 = vmul.f32 1.442695, %v621_v25 }
 0x25e   : > { %v617_v28 = vpop.f32.mrf.mxu3 }
 0x25f   : > { %1362 = vpow2.f32 %v622_v26 }
 0x260   : > { %1364 = vpow2.f32 %v632_v32 }
 0x262   : > { %941 = vperm.xlu2 %1350, %v808_v16   ;;  %1349 = vset.pattern.permute.xlu1 %v861_v14 }
 0x264   : > { %v1681_v36 = vpop.permute.xlu1 %754 }
 0x265   : > { %v1363_v33 = vpop.eup %1362 }
 0x266   : > { %v624_v35 = vadd.f32 1.0, %v1363_v33  ;;  %v1365_v38 = vpop.eup %1364 }
 0x267   : > { %v1690_v46 = vsub.f32 0.0, %v1365_v38 }
 0x268   : > { %1366 = vlog2.f32 %v624_v35 }
 0x269   : > { %1368 = vpow2.f32 %v630_v34 }
 0x26a   : > { %935 = vperm.xlu1 %1349, %v1650_v10  }
 0x26c   : > { %v1686_v44 = vpop.permute.xlu1 %767  ;;  %v820_v10 = vpop.permute.xlu2 %819 }
 0x26e   : > { %v1367_v39 = vpop.eup %1366 }
 0x26f   : > { %v1369_v41 = vpop.eup %1368  ;;  %v626_v43 = vmul.f32 0.6931472, %v1367_v39  ;;  %v807_v39 = vpop.permute.xlu0 %806 }
 0x270   : > { %v1692_v47 = vsub.f32 0.0, %v1369_v41 }
 0x271   : > { %v1688_v45 = vadd.f32 %v626_v43, %v619_v42 }
 0x272   : > { %947 = vperm.xlu1 %1349, %v808_v16  }
 0x273   : > { %v1696_v48 = vmul.f32 %v1688_v45, %v1639_v0  ;;  %v637_v49 = vrot.slane %v1688_v45, 1  ;;  %v638_v50 = vrot.slane %v1688_v45, 2  ;;  %v644_v51 = vperm.slane %v1688_v45, 0 }
 0x274   : > { %v639_v62 = vrot.slane %v1688_v45, 3  ;;  %v1714_v5 = vpop.permute.xlu1 %780  ;;  %v640_v12 = vrot.slane %v1688_v45, 4  ;;  %v641_v22 = vrot.slane %v1688_v45, 5  ;;  %v642_v23 = vrot.slane %v1688_v45, 6 }
 0x275   : > { %v715_v53 = vrot.slane %v1696_v48, 6  ;;  %v645_v54 = vperm.slane %v637_v49, 0  ;;  %v646_v55 = vperm.slane %v638_v50, 0  ;;  %v661_v56 = vmul.f32 %v644_v51, %v1690_v46 }
 0x276   : > { %v660_v57 = vmul.f32 %v644_v51, %v1692_v47  ;;  %v710_v4 = vrot.slane %v1696_v48, 1  ;;  %v821_v7 = vperm.slane %v1696_v48, 0  ;;  %v716_v11 = vrot.slane %v1696_v48, 7 }
 0x277   : > { %v1704_v58 = vperm.slane %v715_v53, 0  ;;  %v663_v59 = vmul.f32 %v645_v54, %v1690_v46  ;;  %v665_v60 = vmul.f32 %v646_v55, %v1690_v46  ;;  %v678_v61 = vmul.f32 1.442695, %v661_v56 }
 0x278   : > { %v662_v2 = vmul.f32 %v645_v54, %v1692_v47  ;;  %v664_v8 = vmul.f32 %v646_v55, %v1692_v47  ;;  %v676_v9 = vmul.f32 1.442695, %v660_v57  ;;  %v711_v13 = vrot.slane %v1696_v48, 2 }
 0x279   : > { %v1710_v63 = vmul.f32 %v1704_v58, %v801_v52  ;;  %1370 = vpow2.f32 %v678_v61  ;;  %v682_v1 = vmul.f32 1.442695, %v663_v59  ;;  %v686_v6 = vmul.f32 1.442695, %v665_v60 }
 0x27a   : > { %v680_v14 = vmul.f32 1.442695, %v662_v2  ;;  %v647_v15 = vperm.slane %v639_v62, 0  ;;  %v822_v16 = vperm.slane %v710_v4, 0  ;;  %v1721_v19 = vperm.slane %v716_v11, 0 }
 0x27b   : > { %1372 = vpow2.f32 %v682_v1  ;;  %v838_v25 = vmul.f32 %v821_v7, %v1669_v21  ;;  %v684_v26 = vmul.f32 1.442695, %v664_v8  ;;  %v714_v28 = vrot.slane %v1696_v48, 5 }
 0x27c   : > { %1374 = vpow2.f32 %v676_v9  ;;  %v1728_v31 = vmul.f32 %v1721_v19, %v820_v10  ;;  %v648_v32 = vperm.slane %v640_v12, 0  ;;  %v667_v33 = vmul.f32 %v647_v15, %v1690_v46  ;;  %v1740_v57 = vpop.permute.xlu2 %863 }
 0x27d   : > { %1376 = vpow2.f32 %v686_v6  ;;  %v823_v34 = vperm.slane %v711_v13, 0  ;;  %v666_v35 = vmul.f32 %v647_v15, %v1692_v47  ;;  %v840_v41 = vmul.f32 %v822_v16, %v1660_v17  ;;  %v1742_v17 = vpop.permute.xlu1 %793 }
 0x27e   : > { %1378 = vpow2.f32 %v680_v14  ;;  %v837_v21 = vmul.f32 %v821_v7, %v723_v3  ;;  %v690_v43 = vmul.f32 1.442695, %v667_v33  ;;  %v712_v50 = vrot.slane %v1696_v48, 3 }
 0x27f   : > { %v1371_v24 = vpop.eup %1370  ;;  %v1736_v51 = vperm.slane %v714_v28, 0  ;;  %v649_v52 = vperm.slane %v641_v22, 0  ;;  %v650_v53 = vperm.slane %v642_v23, 0  ;;  %1380 = vpow2.f32 %v684_v26 }
 0x280   : > { %v950_v30 = vmul.f32 0.0, %v1371_v24  ;;  %v668_v56 = vmul.f32 %v648_v32, %v1692_v47  ;;  %v688_v60 = vmul.f32 1.442695, %v666_v35  ;;  %1382 = vpow2.f32 %v690_v43 }
 0x281   : > { %v1373_v38 = vpop.eup %1372  ;;  %v1746_v61 = vmul.f32 %v1736_v51, %v1683_v37  ;;  %v670_v62 = vmul.f32 %v649_v52, %v1692_v47  ;;  %v842_v1 = vmul.f32 %v823_v34, %v1681_v36  ;;  %v672_v4 = vmul.f32 %v650_v53, %v1692_v47 }
 0x282   : > { %v1733_v42 = vadd.f32 %v950_v30, %v838_v25  ;;  %v1375_v49 = vpop.eup %1374  ;;  %v839_v7 = vmul.f32 %v822_v16, %v1671_v27  ;;  %v824_v8 = vperm.slane %v712_v50, 0  ;;  %v669_v9 = vmul.f32 %v648_v32, %v1690_v46  ;;  %v1764_v27 = vpop.permute.xlu0 %869 }
 0x283   : > { %v949_v55 = vmul.f32 0.0, %v1375_v49  ;;  %v1377_v59 = vpop.eup %1376  ;;  %v671_v10 = vmul.f32 %v649_v52, %v1690_v46  ;;  %v692_v12 = vmul.f32 1.442695, %v668_v56  ;;  %v643_v36 = vrot.slane %v1688_v45, 7 }
 0x284   : > { %v967_v54 = vmul.f32 %v1373_v38, %v1733_v42  ;;  %v1379_v6 = vpop.eup %1378  ;;  %1384 = vpow2.f32 %v688_v60  ;;  %v694_v13 = vmul.f32 1.442695, %v669_v9  ;;  %v673_v14 = vmul.f32 %v650_v53, %v1690_v46 }
 0x285   : > { %v1752_v3 = vadd.f32 %v949_v55, %v837_v21  ;;  %v1381_v15 = vpop.eup %1380  ;;  %v713_v23 = vrot.slane %v1696_v48, 4  ;;  %v651_v24 = vperm.slane %v643_v36, 0  ;;  %v841_v26 = vmul.f32 %v823_v34, %v1662_v18 }
 0x286   : > { %v1750_v2 = vadd.f32 %v967_v54, %v840_v41  ;;  %v1383_v25 = vpop.eup %1382  ;;  %1386 = vpow2.f32 %v694_v13  ;;  %v698_v28 = vmul.f32 1.442695, %v671_v10  ;;  %v850_v45 = vmul.f32 %v1704_v58, %v807_v39 }
 0x287   : > { %v966_v11 = vmul.f32 %v1379_v6, %v1752_v3  ;;  %v844_v32 = vmul.f32 %v824_v8, %v1686_v44  ;;  %1388 = vpow2.f32 %v692_v12  ;;  %v696_v41 = vmul.f32 1.442695, %v670_v62 }
 0x288   : > { %v983_v37 = vmul.f32 %v1377_v59, %v1750_v2  ;;  %v674_v18 = vmul.f32 %v651_v24, %v1692_v47  ;;  %v675_v34 = vmul.f32 %v651_v24, %v1690_v46  ;;  %v825_v58 = vperm.slane %v713_v23, 0 }
 0x289   : > { %v1766_v16 = vadd.f32 %v966_v11, %v839_v7  ;;  %1390 = vpow2.f32 %v698_v28  ;;  %v702_v44 = vmul.f32 1.442695, %v673_v14  ;;  %v843_v49 = vmul.f32 %v824_v8, %v1667_v20 }
 0x28a   : > { %v1762_v22 = vadd.f32 %v983_v37, %v842_v1  ;;  %v1385_v43 = vpop.eup %1384  ;;  %1392 = vpow2.f32 %v696_v41  ;;  %v700_v53 = vmul.f32 1.442695, %v672_v4  ;;  %v846_v47 = vmul.f32 %v825_v58, %v1714_v5  ;;  %v900_v55 = vpop.permute.xlu0 %899 }
 0x28b   : > { %v982_v30 = vmul.f32 %v1381_v15, %v1766_v16  ;;  %1394 = vpow2.f32 %v702_v44  ;;  %v706_v59 = vmul.f32 1.442695, %v675_v34  ;;  %v845_v60 = vmul.f32 %v825_v58, %v1673_v29 }
 0x28c   : > { %v999_v33 = vmul.f32 %v1383_v25, %v1762_v22  ;;  %v1774_v35 = vpop.permute.xlu2 %881  ;;  %v814_v38 = vpop.permute.xlu1 %813  ;;  %1396 = vpow2.f32 %v700_v53  ;;  %v704_v8 = vmul.f32 1.442695, %v674_v18  ;;  %v848_v5 = vmul.f32 %v1736_v51, %v1742_v17 }
 0x28d   : > { %v1777_v48 = vmul.f32 %v1721_v19, %v814_v38  ;;  %v1781_v21 = vadd.f32 %v982_v30, %v841_v26  ;;  %v1387_v52 = vpop.eup %1386  ;;  %1398 = vpow2.f32 %v706_v59  ;;  %v954_v23 = vmul.f32 %v1733_v42, %v1740_v57 }
 0x28e   : > { %v1001_v39 = vadd.f32 %v999_v33, %v844_v32  ;;  %v1389_v19 = vpop.eup %1388  ;;  %1400 = vpow2.f32 %v704_v8  ;;  %v970_v53 = vmul.f32 %v1766_v16, %v1764_v27 }
 0x28f   : > { %v998_v50 = vmul.f32 %v1385_v43, %v1781_v21  ;;  %v1391_v20 = vpop.eup %1390  ;;  %v956_v18 = vsel %vm575_vm8, %v954_v23, 0.0 }
 0x290   : > { %v1015_v46 = vmul.f32 %v1387_v52, %v1001_v39  ;;  %v1003_v56 = vmul.f32 %v1001_v39, %v900_v55  ;;  %v1393_v10 = vpop.eup %1392 }
 0x291   : > { %v1000_v54 = vadd.f32 %v998_v50, %v843_v49  ;;  %v1395_v13 = vpop.eup %1394 }
 0x292   : > { %v1787_v6 = vadd.f32 %v1015_v46, %v846_v47  ;;  %v1005_v37 = vsel %vm575_vm8, %v1003_v56, 0.0  ;;  %v1397_v17 = vpop.eup %1396  ;;  %v986_v56 = vmul.f32 %v1781_v21, %v1774_v35 }
 0x293   : > { %v1014_v62 = vmul.f32 %v1389_v19, %v1000_v54  ;;  %v1399_v30 = vpop.eup %1398 }
 0x294   : > { %v894_v1 = vpop.permute.xlu2 %893  ;;  %v1031_v9 = vmul.f32 %v1391_v20, %v1787_v6  ;;  %v1401_v41 = vpop.eup %1400  ;;  %v988_v16 = vsel %vm575_vm8, %v986_v56, 0.0 }
 0x295   : > { %v1002_v7 = vmul.f32 %v1000_v54, %v894_v1  ;;  %v1789_v4 = vadd.f32 %v1014_v62, %v845_v60 }
 0x296   : > { %v1797_v36 = vadd.f32 %v1031_v9, %v848_v5 }
 0x297   : > { %v1004_v29 = vsel %vm575_vm8, %v1002_v7, 0.0  ;;  %v1030_v11 = vmul.f32 %v1393_v10, %v1789_v4 }
 0x298   : > { %v1006_v12 = vadd.f32 %v1005_v37, %v1004_v29  ;;  %v1047_v51 = vmul.f32 %v1395_v13, %v1797_v36 }
 0x299   : > { %v1800_v14 = vadd.f32 %v1030_v11, %v1746_v61 }
 0x29a   : > { %v1007_v15 = vrot.slane %v1006_v12, 4  ;;  %v1806_v28 = vadd.f32 %v1047_v51, %v850_v45 }
 0x29b   : > { %v1046_v24 = vmul.f32 %v1397_v17, %v1800_v14 }
 0x29c   : > { %v1008_v25 = vadd.f32 %v1007_v15, %v1006_v12  ;;  %v858_v26 = vpop.permute.xlu1 %857  ;;  %v1063_v38 = vmul.f32 %v1399_v30, %v1806_v28 }
 0x29d   : > { %v953_v32 = vmul.f32 %v1752_v3, %v858_v26  ;;  %v1810_v33 = vadd.f32 %v1046_v24, %v1710_v63 }
 0x29e   : > { %v1009_v61 = vrot.slane %v1008_v25, 2  ;;  %v1817_v45 = vadd.f32 %v1063_v38, %v1728_v31 }
 0x29f   : > { %v955_v42 = vsel %vm575_vm8, %v953_v32, 0.0  ;;  %v1062_v58 = vmul.f32 %v1401_v41, %v1810_v33 }
 0x2a0   : > { %v1010_v57 = vadd.f32 %v1009_v61, %v1008_v25  ;;  %v957_v34 = vadd.f32 %v956_v18, %v955_v42 }
 0x2a1   : > { %v1820_v63 = vadd.f32 %v1062_v58, %v1777_v48  ;;  %v972_v48 = vsel %vm575_vm8, %v970_v53, 0.0 }
 0x2a2   : > { %v1011_v39 = vrot.slane %v1010_v57, 1  ;;  %v958_v3 = vrot.slane %v957_v34, 4 }
 0x2a4   : > { %v1012_v43 = vadd.f32 %v1011_v39, %v1010_v57  ;;  %v959_v44 = vadd.f32 %v958_v3, %v957_v34  ;;  %v912_v10 = vpop.permute.xlu2 %911  ;;  %v930_v39 = vpop.permute.xlu0 %929 }
 0x2a5   : > { %v1019_v29 = vmul.f32 %v1787_v6, %v912_v10 }
 0x2a6   : > { %1013 = vst.msk [vmem:[#allocation2 + $0x3] sm:$0x1] %vm964_vm11, %v1012_v43  ;;  %v960_v49 = vrot.slane %v959_v44, 2  ;;  %v1050_v43 = vmul.f32 %v1810_v33, %v930_v39  ;;  %v1287_v33 = vld [vmem:[%s1919_s11] sm:$0xff] }
 0x2a7   : > { %v1021_v13 = vsel %vm575_vm8, %v1019_v29, 0.0 }
 0x2a8   : > { %v961_v50 = vadd.f32 %v960_v49, %v959_v44  ;;  %v1052_v53 = vsel %vm575_vm8, %v1050_v43, 0.0 }
 0x2aa   : > { %v962_v52 = vrot.slane %v961_v50, 1 }
 0x2ac   : > { %v963_v19 = vadd.f32 %v962_v52, %v961_v50  ;;  %v876_v54 = vpop.permute.xlu1 %875  ;;  %v924_v51 = vpop.permute.xlu2 %923  ;;  %v1288_v50 = vld [vmem:[%s1919_s11 + $0x8] sm:$0xff] }
 0x2ad   : > { %v971_v31 = vmul.f32 %v1750_v2, %v876_v54  ;;  %v1035_v24 = vmul.f32 %v1797_v36, %v924_v51  ;;  %v1290_v36 = vld [vmem:[%s1919_s11 + $0x18] sm:$0xff] }
 0x2ae   : > { %965 = vst.msk [vmem:[#allocation2] sm:$0x1] %vm964_vm11, %v963_v19  ;;  %1131 = vmatpush.bf16.msrb.mxu3 %v1290_v36 }
 0x2af   : > { %v973_v47 = vsel %vm575_vm8, %v971_v31, 0.0  ;;  %v1037_v32 = vsel %vm575_vm8, %v1035_v24, 0.0 }
 0x2b0   : > { %v974_v55 = vadd.f32 %v973_v47, %v972_v48 }
 0x2b2   : > { %v975_v46 = vrot.slane %v974_v55, 4 }
 0x2b4   : > { %v976_v59 = vadd.f32 %v975_v46, %v974_v55  ;;  %v888_v60 = vpop.permute.xlu1 %887 }
 0x2b5   : > { %v987_v62 = vmul.f32 %v1762_v22, %v888_v60 }
 0x2b6   : > { %v977_v27 = vrot.slane %v976_v59, 2 }
 0x2b7   : > { %v989_v2 = vsel %vm575_vm8, %v987_v62, 0.0 }
 0x2b8   : > { %v978_v1 = vadd.f32 %v977_v27, %v976_v59  ;;  %v990_v20 = vadd.f32 %v989_v2, %v988_v16  ;;  %v1085_v16 = vmul.f32 0.5, %v1630_v40 }
 0x2ba   : > { %v979_v7 = vrot.slane %v978_v1, 1  ;;  %v991_v8 = vrot.slane %v990_v20, 4  ;;  %1402 = vtanh.f32 %v1085_v16 }
 0x2bc   : > { %v980_v5 = vadd.f32 %v979_v7, %v978_v1  ;;  %v992_v9 = vadd.f32 %v991_v8, %v990_v20  ;;  %v942_v54 = vpop.permute.xlu2 %941 }
 0x2bd   : > { %v1066_v47 = vmul.f32 %v1820_v63, %v942_v54 }
 0x2be   : > { %981 = vst.msk [vmem:[#allocation2 + $0x1] sm:$0x1] %vm964_vm11, %v980_v5  ;;  %v993_v37 = vrot.slane %v992_v9, 2 }
 0x2bf   : > { %v1068_v59 = vsel %vm575_vm8, %v1066_v47, 0.0 }
 0x2c0   : > { %v994_v35 = vadd.f32 %v993_v37, %v992_v9  ;;  %v1403_v5 = vpop.eup %1402  ;;  %v1355_v37 = vld [vmem:[%s1918_s10] ss:$0 sm:$0xff] }
 0x2c1   : > { %v1087_v10 = vmul.f32 0.5, %v1403_v5 }
 0x2c2   : > { %v995_v21 = vrot.slane %v994_v35, 1 }
 0x2c4   : > { %v996_v22 = vadd.f32 %v995_v21, %v994_v35  ;;  %v906_v11 = vpop.permute.xlu1 %905  ;;  %v1088_v35 = vadd.f32 0.5, %v1087_v10  ;;  %v1083_v21 = vmul.f32 %v1355_v37, %v1639_v0 }
 0x2c5   : > { %v1018_v12 = vmul.f32 %v1789_v4, %v906_v11 }
 0x2c6   : > { %997 = vst.msk [vmem:[#allocation2 + $0x2] sm:$0x1] %vm964_vm11, %v996_v22  ;;  %v1089_v22 = vmul.f32 %v1088_v35, %v1630_v40 }
 0x2c7   : > { %v1020_v15 = vsel %vm575_vm8, %v1018_v12, 0.0 }
 0x2c8   : > { %v1022_v17 = vadd.f32 %v1021_v13, %v1020_v15 }
 0x2ca   : > { %v1023_v23 = vrot.slane %v1022_v17, 4 }
 0x2cc   : > { %v1024_v25 = vadd.f32 %v1023_v23, %v1022_v17  ;;  %v918_v26 = vpop.permute.xlu1 %917 }
 0x2cd   : > { %v1034_v30 = vmul.f32 %v1800_v14, %v918_v26  ;;  %v1289_v14 = vld [vmem:[%s1919_s11 + $0x10] sm:$0xff] }
 0x2ce   : > { %v1025_v6 = vrot.slane %v1024_v25, 2  ;;  %1132 = vmatpush.bf16.msrb.mxu3 %v1289_v14 }
 0x2cf   : > { %v1036_v4 = vsel %vm575_vm8, %v1034_v30, 0.0 }
 0x2d0   : > { %v1026_v61 = vadd.f32 %v1025_v6, %v1024_v25  ;;  %v1038_v38 = vadd.f32 %v1037_v32, %v1036_v4 }
 0x2d2   : > { %v1027_v41 = vrot.slane %v1026_v61, 1  ;;  %v1039_v18 = vrot.slane %v1038_v38, 4  ;;  %1133 = vmatpush.bf16.msrb.mxu3 %v1288_v50 }
 0x2d4   : > { %v1028_v42 = vadd.f32 %v1027_v41, %v1026_v61  ;;  %v1040_v57 = vadd.f32 %v1039_v18, %v1038_v38 }
 0x2d6   : > { %1029 = vst.msk [vmem:[#allocation2 + $0x4] sm:$0x1] %vm964_vm11, %v1028_v42  ;;  %v1041_v34 = vrot.slane %v1040_v57, 2  ;;  %1134 = vmatpush.bf16.msrb.mxu3 %v1287_v33 }
 0x2d8   : > { %v1042_v58 = vadd.f32 %v1041_v34, %v1040_v57 }
 0x2da   : > { %v1043_v3 = vrot.slane %v1042_v58, 1 }
 0x2dc   : > { %v1044_v44 = vadd.f32 %v1043_v3, %v1042_v58  ;;  %v936_v49 = vpop.permute.xlu1 %935 }
 0x2dd   : > { %v1051_v52 = vmul.f32 %v1806_v28, %v936_v49 }
 0x2de   : > { %1045 = vst.msk [vmem:[#allocation2 + $0x5] sm:$0x1] %vm964_vm11, %v1044_v44 }
 0x2df   : > { %v1053_v19 = vsel %vm575_vm8, %v1051_v52, 0.0 }
 0x2e0   : > { %v1054_v31 = vadd.f32 %v1053_v19, %v1052_v53 }
 0x2e2   : > { %v1055_v48 = vrot.slane %v1054_v31, 4 }
 0x2e4   : > { %v1056_v55 = vadd.f32 %v1055_v48, %v1054_v31  ;;  %v948_v46 = vpop.permute.xlu1 %947 }
 0x2e5   : > { %v1067_v28 = vmul.f32 %v1817_v45, %v948_v46 }
 0x2e6   : > { %v1057_v56 = vrot.slane %v1056_v55, 2 }
 0x2e7   : > { %v1069_v60 = vsel %vm575_vm8, %v1067_v28, 0.0 }
 0x2e8   : > { %v1058_v62 = vadd.f32 %v1057_v56, %v1056_v55  ;;  %v1070_v27 = vadd.f32 %v1069_v60, %v1068_v59 }
 0x2ea   : > { %v1059_v2 = vrot.slane %v1058_v62, 1  ;;  %v1071_v1 = vrot.slane %v1070_v27, 4 }
 0x2ec   : > { %v1060_v20 = vadd.f32 %v1059_v2, %v1058_v62  ;;  %v1072_v7 = vadd.f32 %v1071_v1, %v1070_v27 }
 0x2ee   : > { %1061 = vst.msk [vmem:[#allocation2 + $0x6] sm:$0x1] %vm964_vm11, %v1060_v20  ;;  %v1073_v63 = vrot.slane %v1072_v7, 2 }
 0x2f0   : > { %v1074_v8 = vadd.f32 %v1073_v63, %v1072_v7 }
 0x2f2   : > { %v1075_v45 = vrot.slane %v1074_v8, 1 }
 0x2f4   : > { %v1076_v9 = vadd.f32 %v1075_v45, %v1074_v8 }
 0x2f6   : > { %1077 = vst.msk [vmem:[#allocation2 + $0x7] sm:$0x1] %vm964_vm11, %v1076_v9 }
 0x2fd   : > { %v1078_v29 = vld [vmem:[#allocation2] sm:$0xff] }
 0x2fe   : > { %v1084_v11 = vadd.f32 %v1083_v21, %v1078_v29 }
 0x300   : > { %v1090_v12 = vmul.f32 %v1089_v22, %v1084_v11 }
 0x302   : > { %v1091_v13 = vpack.c.bf16 %v1090_v12, %v1090_v12 }
 0x304   : > { %1274 = vmatmul.msk.bf16.vlgmr.msrb.gmra.mxu3 %vm575_vm8, %v1091_v13 }
 0x387   : > { %v1136_v0 = vpop.f32.mrf.mxu3 }
 0x388   : > { %1140 = vst.msk [vmem:[%s404_s26] sm:$0xff] %vm412_vm0, %v1136_v0 }
 0x389   : > { %1431 = shalt.err (!%p1428_p3)
}
 0x38a   : > { %1291 = dma.vmem_to_hbm [thread:$0]  (%p1572_p5), %s1155_s28, 128, %s1157_s29, %s1142_s0  }
 0x38f   : > { %v1138_v40 = vpop.f32.mrf.mxu3 }
 0x390 PF: > { %p1297_p4 = scmp.ge.s32.totalorder %s1466_s24, 2  ;;  %s1168_s15 = sand.u32 1, %s1454_s21  }
 0x391   : > { %s1169_s3 = scalar_lea.sflag [#allocation4], %s1168_s15 }
 0x392   : > { %p1294_p7 = pnand %p1297_p4, %p1576_p6 }
 0x394   : > { %p1295_p8 = pneg %p1294_p7 }
 0x396   : > { %1449 = dma.done.wait (%p1295_p8), %s1169_s3, 128  }
 0x397   : > { %1451 = vsyncadd (%p1295_p8), %s1169_s3, 4294967168  ;;  %p22_p9 = scmp.ge.s32.totalorder %s1559_s27, 4   ;;  %s1931_s21 = smov %s1458_s22 }
 0x398   : > { %s1932_s22 = smov %s1462_s23  ;;  %s1933_s23 = smov %s1570_s30 }
 0x399   : > { %s1934_s24 = smov %s1559_s27  ;;  %24 = sbr.rel (!%p22_p9) target bundleno = 8 (0x8), region = 103 }
 0x39e   :  { %1175 = vsyncpa [#allocation4], 1 }
 0x39f   :  { %1177 = vsyncpa [#allocation4 + $0x1], 1 }

</bundles_post_ra>
